<compile_context>
chip_gen: v7x
topology: tpu7x:2x2x1
jax: 0.10.0
libtpu: 0.0.40
codegen_flags: <defaults>
</compile_context>

<pallas_src>
import functools

import jax
import jax.numpy as jnp
from jax.experimental import pallas as pl
from jax.experimental.pallas import tpu as pltpu


_TARGET_BLOCK_BYTES = 2 * 1024 * 1024  # ~2 MiB native-dtype logits block per grid step


def _round_up(x, m):
    return ((x + m - 1) // m) * m


def _sublane_multiple(dtype):
    # Sub-32-bit dtypes pack along sublanes: 8 rows for f32, 16 for bf16, 32 for int8.
    return max(8, 32 // jnp.dtype(dtype).itemsize)


def _vmem_limits():
    """(data_budget_bytes, vmem_limit_bytes) derived from the local TPU generation."""
    try:
        cap = int(pltpu.get_tpu_info().vmem_capacity_bytes)
    except Exception:
        cap = 64 * 1024 * 1024  # conservative fallback (v7x per-TC VMEM)
    vmem_limit = int(min(cap // 2, 48 * 1024 * 1024))   # v7x: 32 MiB, v5e/v6e: 48 MiB
    data_budget = (vmem_limit * 3) // 4                 # headroom for compiler temporaries
    return data_budget, vmem_limit


def _row_bytes(c_block, itemsize):
    # Double-buffered native-dtype logits block + ~3 f32 working copies inside the body.
    return 2 * c_block * itemsize + 3 * c_block * 4


def _choose_row_tile(N, n_padded, mult, c_block, itemsize, data_budget, tile_n):
    if tile_n is not None:
        tile = min(int(tile_n), n_padded)
    else:
        rows_target = max(_TARGET_BLOCK_BYTES // (c_block * itemsize), mult)
        rows_budget = max(data_budget // _row_bytes(c_block, itemsize), mult)
        tile = min(rows_target, rows_budget, n_padded)
    tile = max(mult, (tile // mult) * mult)
    # Keep >= 2 row tiles when N allows so the "parallel" axis can shard across both TCs (v7x).
    if tile_n is None and int(pl.cdiv(N, tile)) == 1 and n_padded >= 2 * mult:
        tile = _round_up(int(pl.cdiv(N, 2)), mult)
    return int(tile)


def _pow_gamma(omp, gamma):
    # Specialize small integer gamma to repeated VALU multiplies (pow -> log+exp on the EUP).
    g_int = int(gamma)
    if float(g_int) == float(gamma) and 0 <= g_int <= 8:
        if g_int == 0:
            return jnp.ones_like(omp)
        w = omp
        for _ in range(g_int - 1):
            w = w * omp
        return w
    return omp ** gamma


def _finalize_tile(i, focal, tn, tile_n, n_valid, mask_tail, out_ref):
    # Mask rows beyond the real N (jnp.where is a select -> NaN/Inf in padded rows cannot
    # propagate; do NOT turn this into multiplication by a 0/1 mask).
    if mask_tail:
        row = i * tile_n + jax.lax.broadcasted_iota(jnp.int32, (tn, 1), 0)
        focal = jnp.where(row < n_valid, focal, 0.0)
    tile_sum = jnp.sum(focal)
    # Lane-dense (1, 128) partial-sum output block: value in lane 0, zeros elsewhere.
    lane = jax.lax.broadcasted_iota(jnp.int32, (1, 128), 1)
    out_ref[...] = jnp.where(lane == 0, tile_sum, 0.0)


# ----------------------------------------------------------------------------------------
# Kernel 1: whole class dimension per block (common case).
# ----------------------------------------------------------------------------------------
def _focal_loss_kernel(logits_ref, target_ref, alpha_t_ref, out_ref, *,
                       gamma, n_valid, tile_n, mask_tail):
    i = pl.program_id(0)

    x = logits_ref[...].astype(jnp.float32)   # (TILE_N, C) — f32 cast per tile in VMEM
    tgt = target_ref[...]                     # (TILE_N, 1) int32 class indices
    alpha_t = alpha_t_ref[...]                # (TILE_N, 1) f32 per-sample class weight
    tn, c = x.shape

    # Numerically stable log-sum-exp over classes.
    m = jnp.max(x, axis=-1, keepdims=True)
    lse = m + jnp.log(jnp.sum(jnp.exp(x - m), axis=-1, keepdims=True))

    # Gather the target-class logit with a masked select (no one-hot f32 cast / multiply).
    col = jax.lax.broadcasted_iota(jnp.int32, (tn, c), 1)
    x_t = jnp.sum(jnp.where(col == tgt, x, 0.0), axis=-1, keepdims=True)
    logp_t = x_t - lse

    ce = -alpha_t * logp_t                    # weighted CE per sample
    pt = jnp.exp(-ce)
    omp = jnp.maximum(1.0 - pt, 0.0)          # clamp: pt can round slightly above 1
    focal = _pow_gamma(omp, gamma) * ce       # (TILE_N, 1)

    _finalize_tile(i, focal, tn, tile_n, n_valid, mask_tail, out_ref)


# ----------------------------------------------------------------------------------------
# Kernel 2: class dimension chunked (vocab-scale C) — online LSE with VMEM scratch.
# ----------------------------------------------------------------------------------------
def _focal_loss_kernel_chunked(logits_ref, target_ref, alpha_t_ref, out_ref,
                               m_sc, s_sc, xt_sc, *,
                               gamma, n_valid, n_classes, tile_n, tile_c,
                               mask_tail, mask_cols):
    i = pl.program_id(0)
    k = pl.program_id(1)

    @pl.when(k == 0)
    def _():
        m_sc[...] = jnp.full_like(m_sc, -jnp.inf)
        s_sc[...] = jnp.zeros_like(s_sc)
        xt_sc[...] = jnp.zeros_like(xt_sc)

    x = logits_ref[...].astype(jnp.float32)   # (TILE_N, TILE_C)
    tgt = target_ref[...]                     # (TILE_N, 1)
    tn, tc = x.shape

    col = k * tile_c + jax.lax.broadcasted_iota(jnp.int32, (tn, tc), 1)
    if mask_cols:
        # Padded columns past C: neutralize with -inf (select, so garbage/NaN never leaks).
        x = jnp.where(col < n_classes, x, -jnp.inf)

    # Online (running-max) log-sum-exp accumulation.
    m_old = m_sc[...]
    m_new = jnp.maximum(m_old, jnp.max(x, axis=-1, keepdims=True))
    s_sc[...] = s_sc[...] * jnp.exp(m_old - m_new) + jnp.sum(
        jnp.exp(x - m_new), axis=-1, keepdims=True)
    m_sc[...] = m_new
    xt_sc[...] = xt_sc[...] + jnp.sum(jnp.where(col == tgt, x, 0.0), axis=-1, keepdims=True)

    @pl.when(k == pl.num_programs(1) - 1)
    def _():
        alpha_t = alpha_t_ref[...]
        lse = m_sc[...] + jnp.log(s_sc[...])
        logp_t = xt_sc[...] - lse
        ce = -alpha_t * logp_t
        pt = jnp.exp(-ce)
        omp = jnp.maximum(1.0 - pt, 0.0)
        focal = _pow_gamma(omp, gamma) * ce
        _finalize_tile(i, focal, tn, tile_n, n_valid, mask_tail, out_ref)


# ----------------------------------------------------------------------------------------
# Wrapper
# ----------------------------------------------------------------------------------------
def focal_loss(logits, target, alpha=None, gamma=2.0, reduction="mean",
               tile_n=None, tile_c=None):
    """Pallas focal loss.

    logits: (N, C) float (native dtype OK — bf16 stays bf16 in HBM), target: (N,) int,
    alpha: (C,) float or None. reduction: 'mean' | 'sum'.
    tile_n / tile_c override the auto-derived row / class tiling (mainly for tests).
    """
    N, C = logits.shape
    if alpha is None:
        alpha = jnp.ones((C,), dtype=jnp.float32)
    alpha = jnp.asarray(alpha, dtype=jnp.float32)
    target = target.astype(jnp.int32)

    # Gather per-sample class weight once in the wrapper (N*4 bytes vs N*C logits).
    alpha_t = jnp.take(alpha, target).reshape(N, 1)
    target2d = target.reshape(N, 1)

    itemsize = jnp.dtype(logits.dtype).itemsize
    mult = _sublane_multiple(logits.dtype)
    n_padded = _round_up(N, mult)
    data_budget, vmem_limit = _vmem_limits()

    # Chunk the class dimension only when even a minimum-row full-C block would blow the
    # VMEM budget (or the caller forces it).
    chunk_c = (tile_c is not None and int(tile_c) < C) or \
              (mult * _row_bytes(C, itemsize) > data_budget)

    common_params = dict(gamma=float(gamma), n_valid=int(N))

    if not chunk_c:
        tile = _choose_row_tile(N, n_padded, mult, C, itemsize, data_budget, tile_n)
        num_tiles = int(pl.cdiv(N, tile))
        cost = pl.CostEstimate(
            flops=8 * N * C,
            transcendentals=N * C + 3 * N,
            bytes_accessed=N * C * itemsize + 2 * N * 4 + num_tiles * 128 * 4,
        )
        kernel = functools.partial(
            _focal_loss_kernel, tile_n=tile, mask_tail=(N % tile != 0), **common_params)
        partials = pl.pallas_call(
            kernel,
            out_shape=jax.ShapeDtypeStruct((1, 128 * num_tiles), jnp.float32),
            grid=(num_tiles,),
            in_specs=[
                pl.BlockSpec((tile, C), lambda i: (i, 0)),
                pl.BlockSpec((tile, 1), lambda i: (i, 0)),
                pl.BlockSpec((tile, 1), lambda i: (i, 0)),
            ],
            out_specs=pl.BlockSpec((1, 128), lambda i: (0, i)),
            compiler_params=pltpu.CompilerParams(
                dimension_semantics=("parallel",),   # tiles independent -> both TCs on v7x
                vmem_limit_bytes=vmem_limit,
            ),
            cost_estimate=cost,
        )(logits, target2d, alpha_t)
    else:
        # Large-C path: second ("arbitrary") grid axis over class chunks + online LSE.
        if tile_c is None:
            tile_c_ = 2048
        else:
            tile_c_ = int(tile_c)
        tile_c_ = max(128, (tile_c_ // 128) * 128)
        tile_c_ = min(tile_c_, _round_up(C, 128))
        tile = _choose_row_tile(N, n_padded, mult, tile_c_, itemsize, data_budget, tile_n)
        num_row = int(pl.cdiv(N, tile))
        num_col = int(pl.cdiv(C, tile_c_))
        cost = pl.CostEstimate(
            flops=8 * N * C,
            transcendentals=N * C + 3 * N,
            bytes_accessed=N * C * itemsize + 2 * N * 4 + num_row * 128 * 4,
        )
        kernel = functools.partial(
            _focal_loss_kernel_chunked, n_classes=int(C),
            tile_n=tile, tile_c=tile_c_,
            mask_tail=(N % tile != 0), mask_cols=(C % tile_c_ != 0), **common_params)
        partials = pl.pallas_call(
            kernel,
            out_shape=jax.ShapeDtypeStruct((1, 128 * num_row), jnp.float32),
            grid=(num_row, num_col),
            in_specs=[
                pl.BlockSpec((tile, tile_c_), lambda i, k: (i, k)),
                pl.BlockSpec((tile, 1), lambda i, k: (i, 0)),
                pl.BlockSpec((tile, 1), lambda i, k: (i, 0)),
            ],
            out_specs=pl.BlockSpec((1, 128), lambda i, k: (0, i)),
            scratch_shapes=[
                pltpu.VMEM((tile, 1), jnp.float32),   # running max
                pltpu.VMEM((tile, 1), jnp.float32),   # running sum(exp)
                pltpu.VMEM((tile, 1), jnp.float32),   # accumulated target logit
            ],
            compiler_params=pltpu.CompilerParams(
                dimension_semantics=("parallel", "arbitrary"),
                vmem_limit_bytes=vmem_limit,
            ),
            cost_estimate=cost,
        )(logits, target2d, alpha_t)

    total = jnp.sum(partials)  # only lane 0 of each partial block is nonzero
    if reduction == "mean":
        # Divides by N (reduction='none' + mean), matching the PyTorch module — not the
        # weighted-mean normalization F.cross_entropy(weight=..., reduction='mean') would use.
        return total / N
    if reduction == "sum":
        return total
    # TODO(synk): reduction='none' would need a per-sample (N,) output; not exposed here.
    raise NotImplementedError("Only 'mean' and 'sum' reductions are implemented in the Pallas kernel.")


def _focal_loss_ref(logits, target, alpha, gamma, reduction="mean"):
    # Pure-JAX reference (mirrors F.cross_entropy(weight=alpha, reduction='none') + focal).
    logp = jax.nn.log_softmax(logits.astype(jnp.float32), axis=-1)
    logp_t = jnp.take_along_axis(logp, target[:, None], axis=-1)[:, 0]
    alpha_t = alpha[target]
    ce = -alpha_t * logp_t
    pt = jnp.exp(-ce)
    focal = (1.0 - pt) ** gamma * ce
    return jnp.mean(focal) if reduction == "mean" else jnp.sum(focal)


if __name__ == "__main__":
    key = jax.random.PRNGKey(0)
    k1, k2, k3, k4 = jax.random.split(key, 4)

    # --- Test 1: auto tiling (single-C-block path), f32, mean + sum ------------------------
    N, C = 20, 32
    logits = jax.random.normal(k1, (N, C), dtype=jnp.float32)
    target = jax.random.randint(k2, (N,), 0, C, dtype=jnp.int32)
    alpha = jnp.linspace(0.5, 1.5, C, dtype=jnp.float32)

    loss = jax.block_until_ready(focal_loss(logits, target, alpha=alpha, gamma=2.0))
    ref = _focal_loss_ref(logits, target, alpha, 2.0, "mean")
    assert jnp.allclose(loss, ref, rtol=1e-5, atol=1e-6), (loss, ref)

    loss_sum = jax.block_until_ready(
        focal_loss(logits, target, alpha=alpha, gamma=2.0, reduction="sum"))
    ref_sum = _focal_loss_ref(logits, target, alpha, 2.0, "sum")
    assert jnp.allclose(loss_sum, ref_sum, rtol=1e-5, atol=1e-5), (loss_sum, ref_sum)

    # --- Test 2: native bf16 logits, explicit row tile -> multi-tile grid + tail masking ---
    logits_bf16 = logits.astype(jnp.bfloat16)
    loss_bf16 = jax.block_until_ready(
        focal_loss(logits_bf16, target, alpha=alpha, gamma=2.0, tile_n=16))
    ref_bf16 = _focal_loss_ref(logits_bf16.astype(jnp.float32), target, alpha, 2.0, "mean")
    assert jnp.allclose(loss_bf16, ref_bf16, rtol=1e-3, atol=1e-3), (loss_bf16, ref_bf16)

    # --- Test 3: forced large-C chunked path (online LSE), non-integer gamma,
    #             C not a multiple of the column chunk (exercises column masking) ----------
    N2, C2 = 20, 200
    logits2 = jax.random.normal(k3, (N2, C2), dtype=jnp.float32)
    target2 = jax.random.randint(k4, (N2,), 0, C2, dtype=jnp.int32)
    alpha2 = jnp.linspace(0.5, 1.5, C2, dtype=jnp.float32)
    loss2 = jax.block_until_ready(
        focal_loss(logits2, target2, alpha=alpha2, gamma=1.5, tile_n=8, tile_c=128))
    ref2 = _focal_loss_ref(logits2, target2, alpha2, 1.5, "mean")
    assert jnp.allclose(loss2, ref2, rtol=1e-5, atol=1e-6), (loss2, ref2)

    print("KERNEL_OK")
</pallas_src>

<mosaic_0001>
module attributes {stable_mosaic.version = 11 : i64} {
  func.func @_focal_loss_kernel(%arg0: i32, %arg1: memref<16x32xf32, #tpu.memory_space<vmem>>, %arg2: memref<16x1xi32, #tpu.memory_space<vmem>>, %arg3: memref<16x1xf32, #tpu.memory_space<vmem>>, %arg4: memref<1x128xf32, #tpu.memory_space<vmem>>) attributes {dimension_semantics = [#tpu.dimension_semantics<parallel>], iteration_bounds = array<i64: 2>, scalar_prefetch = 0 : i64, scratch_operands = 0 : i64, tpu.core_type = #tpu.core_type<tc>, window_params = [{transform_indices = @transform_0, window_bounds = array<i64: 16, 32>}, {transform_indices = @transform_1, window_bounds = array<i64: 16, 1>}, {transform_indices = @transform_2, window_bounds = array<i64: 16, 1>}, {transform_indices = @transform_3, window_bounds = array<i64: 1, 128>}]} {
    %c0 = arith.constant 0 : index
    %c0_0 = arith.constant 0 : index
    %0 = vector.load %arg1[%c0, %c0_0] : memref<16x32xf32, #tpu.memory_space<vmem>>, vector<16x32xf32>
    %c0_1 = arith.constant 0 : index
    %c0_2 = arith.constant 0 : index
    %1 = vector.load %arg2[%c0_1, %c0_2] : memref<16x1xi32, #tpu.memory_space<vmem>>, vector<16x1xi32>
    %c0_3 = arith.constant 0 : index
    %c0_4 = arith.constant 0 : index
    %2 = vector.load %arg3[%c0_3, %c0_4] : memref<16x1xf32, #tpu.memory_space<vmem>>, vector<16x1xf32>
    %cst = arith.constant dense<0xFF800000> : vector<16xf32>
    %3 = vector.multi_reduction <maximumf>, %0, %cst [1] : vector<16x32xf32> to vector<16xf32>
    %4 = vector.shape_cast %3 : vector<16xf32> to vector<16x1xf32>
    %5 = vector.broadcast %4 : vector<16x1xf32> to vector<16x32xf32>
    %6 = arith.subf %0, %5 : vector<16x32xf32>
    %7 = math.exp %6 : vector<16x32xf32>
    %cst_5 = arith.constant dense<0.000000e+00> : vector<16xf32>
    %8 = vector.multi_reduction <add>, %7, %cst_5 [1] : vector<16x32xf32> to vector<16xf32>
    %9 = vector.shape_cast %8 : vector<16xf32> to vector<16x1xf32>
    %10 = math.log %9 : vector<16x1xf32>
    %11 = arith.addf %4, %10 : vector<16x1xf32>
    %12 = tpu.iota {dimensions = array<i32: 1>} : vector<16x32xi32>
    %13 = vector.broadcast %1 : vector<16x1xi32> to vector<16x32xi32>
    %14 = arith.cmpi eq, %12, %13 : vector<16x32xi32>
    %cst_6 = arith.constant 0.000000e+00 : f32
    %15 = vector.broadcast %cst_6 : f32 to vector<16x32xf32>
    %16 = arith.select %14, %0, %15 : vector<16x32xi1>, vector<16x32xf32>
    %cst_7 = arith.constant dense<0.000000e+00> : vector<16xf32>
    %17 = vector.multi_reduction <add>, %16, %cst_7 [1] : vector<16x32xf32> to vector<16xf32>
    %18 = vector.shape_cast %17 : vector<16xf32> to vector<16x1xf32>
    %19 = arith.subf %18, %11 : vector<16x1xf32>
    %cst_8 = arith.constant 0.000000e+00 : f32
    %20 = vector.broadcast %cst_8 : f32 to vector<16x1xf32>
    %21 = arith.subf %20, %2 : vector<16x1xf32>
    %22 = arith.mulf %21, %19 : vector<16x1xf32>
    %cst_9 = arith.constant 0.000000e+00 : f32
    %23 = vector.broadcast %cst_9 : f32 to vector<16x1xf32>
    %24 = arith.subf %23, %22 : vector<16x1xf32>
    %25 = math.exp %24 : vector<16x1xf32>
    %cst_10 = arith.constant 1.000000e+00 : f32
    %26 = vector.broadcast %cst_10 : f32 to vector<16x1xf32>
    %27 = arith.subf %26, %25 : vector<16x1xf32>
    %cst_11 = arith.constant 0.000000e+00 : f32
    %28 = vector.broadcast %cst_11 : f32 to vector<16x1xf32>
    %29 = arith.maximumf %27, %28 : vector<16x1xf32>
    %30 = arith.mulf %29, %29 : vector<16x1xf32>
    %31 = arith.mulf %30, %22 : vector<16x1xf32>
    %c16_i32 = arith.constant 16 : i32
    %32 = arith.muli %arg0, %c16_i32 : i32
    %33 = tpu.iota {dimensions = array<i32: 0>} : vector<16x1xi32>
    %34 = vector.broadcast %32 : i32 to vector<16x1xi32>
    %35 = arith.addi %34, %33 : vector<16x1xi32>
    %c20_i32 = arith.constant 20 : i32
    %36 = vector.broadcast %c20_i32 : i32 to vector<16x1xi32>
    %37 = arith.cmpi slt, %35, %36 : vector<16x1xi32>
    %cst_12 = arith.constant 0.000000e+00 : f32
    %38 = vector.broadcast %cst_12 : f32 to vector<16x1xf32>
    %39 = arith.select %37, %31, %38 : vector<16x1xi1>, vector<16x1xf32>
    %40 = vector.shape_cast %39 : vector<16x1xf32> to vector<1x16x1xf32>
    %cst_13 = arith.constant dense<0.000000e+00> : vector<1xf32>
    %41 = vector.multi_reduction <add>, %40, %cst_13 [1, 2] : vector<1x16x1xf32> to vector<1xf32>
    %42 = vector.shape_cast %41 : vector<1xf32> to vector<1x1x1xf32>
    %43 = vector.extract %42[0, 0, 0] : f32 from vector<1x1x1xf32>
    %44 = tpu.iota {dimensions = array<i32: 1>} : vector<1x128xi32>
    %c0_i32 = arith.constant 0 : i32
    %45 = vector.broadcast %c0_i32 : i32 to vector<1x128xi32>
    %46 = arith.cmpi eq, %44, %45 : vector<1x128xi32>
    %cst_14 = arith.constant 0.000000e+00 : f32
    %47 = vector.broadcast %43 : f32 to vector<1x128xf32>
    %48 = vector.broadcast %cst_14 : f32 to vector<1x128xf32>
    %49 = arith.select %46, %47, %48 : vector<1x128xi1>, vector<1x128xf32>
    %c0_15 = arith.constant 0 : index
    %c0_16 = arith.constant 0 : index
    %50 = vector.load %arg4[%c0_15, %c0_16] : memref<1x128xf32, #tpu.memory_space<vmem>>, vector<1x128xf32>
    tpu.vector_store %arg4[%c0_15, %c0_16], %49 {strides = array<i32>} : memref<1x128xf32, #tpu.memory_space<vmem>>, vector<1x128xf32>,
    return
  }
  func.func @transform_0(%arg0: i32) -> (i32, i32) {
    %c0_i32 = arith.constant 0 : i32
    %c0_i32_0 = arith.constant 0 : i32
    return %arg0, %c0_i32 : i32, i32
  }
  func.func @transform_1(%arg0: i32) -> (i32, i32) {
    %c0_i32 = arith.constant 0 : i32
    %c0_i32_0 = arith.constant 0 : i32
    return %arg0, %c0_i32 : i32, i32
  }
  func.func @transform_2(%arg0: i32) -> (i32, i32) {
    %c0_i32 = arith.constant 0 : i32
    %c0_i32_0 = arith.constant 0 : i32
    return %arg0, %c0_i32 : i32, i32
  }
  func.func @transform_3(%arg0: i32) -> (i32, i32) {
    %c0_i32 = arith.constant 0 : i32
    %c0_i32_0 = arith.constant 0 : i32
    return %c0_i32, %arg0 : i32, i32
  }
}

</mosaic_0001>

<bundles_post_ra>
// kernel: tpu_custom_call.1
= control target key start
LH: loop header
LB: loop body
LE: loop exit
PB: predicated region body
PF: predicated region fallthrough
CT: control target
= control target key end

     0   :  { %8 = vsyncpa [#allocation3], 0  ;;  %s744_s0 = inlined_call_operand.vmem [shape: f32[20,32], index: 0, kind: input, shape index: {}]   ;;  %s745_s1 = inlined_call_operand.vmem [shape: s32[20,1], index: 1, kind: input, shape index: {}]   ;;  %s746_s2 = inlined_call_operand.vmem [shape: f32[20,1], index: 2, kind: input, shape index: {}]   ;;  %s747_s3 = inlined_call_operand.hbm [shape: f32[1,256], index: 3, kind: output, shape index: {}]  }
   0x1   :  { %10 = vsyncpa [#allocation3 + $0x1], 0  ;;  %s619_s12 = smov 0   ;;  %s621_s13 = smov 0  }
   0x2   :  { %s623_s14 = smov 0   ;;  %s625_s15 = smov 0  }
   0x3 LB: > { %s640_s16 = sadd.s32 4294967295, %s595_s15   ;;  %s463_s17 = sadd.s32 4294967294, %s595_s15   ;;  %s595_s15 = sphi %s625_s15, %s753_s15   ;;  %s591_s14 = sphi %s623_s14, %s752_s14   ;;  %s587_s13 = sphi %s621_s13, %s751_s13   ;;  %s583_s12 = sphi %s619_s12, %s750_s12  }
   0x4   : > { %s644_s18 = sadd.s32 1, %s595_s15   ;;  %s101_s19 = sadd.s32 1, %s591_s14 }
   0x5   : > { %s98_s20 = ssub.s32 %s595_s15, %s644_s18  ;;  %p111_p0 = scmp.ne.s32.totalorder %s591_s14, %s587_s13 }
   0x6   : > { %p99_p1 = scmp.eq.s32.totalorder %s98_s20, 0  ;;  %p112_p2 = scmp.eq.s32.totalorder %s640_s16, 1 }
   0x7   : > { %p117_p3 = scmp.ne.s32.totalorder %s587_s13, %s583_s12  ;;  %p118_p4 = scmp.eq.s32.totalorder %s463_s17, 1 }
   0x8   : > { %s655_s21 = scalar_select %p99_p1, %s591_s14, %s101_s19  }
   0x9   : > { %p657_p5 = por %p112_p2, %p111_p0  ;;  %p661_p6 = por %p118_p4, %p117_p3 }
   0xa   : > { %p466_p7 = scmp.ge.s32.totalorder %s595_s15, 1  ;;  %p187_p8 = scmp.lt.s32.totalorder %s595_s15, 3 }
   0xc   : > { %p188_p9 = pnand %p466_p7, %p187_p8 }
   0xd   : > { %s467_s24 = sshll.u32 (!%p188_p9), %s640_s16, 1  ;;  %v597_v0 = vmov (!%p188_p9), 0   ;;  %vm280_vm0 = vcmask (!%p188_p9), 261120   ;;  %v305_v11 = vlaneseq (!%p188_p9)  ;;  %s473_s8 = sshll.u32 (!%p188_p9), %s640_s16, 4  ;;  %vm354_vm5 = vcmask (!%p188_p9), 7168  }
   0xe   : > { %191 = sbr.rel (%p188_p9) target bundleno = 596 (0x254), region = 32  ;;  %p237_p10 = scmp.lt.s32.totalorder (!%p188_p9), %s467_s24, 2  ;;  %519 = vset.pattern.permute.xlu1 (!%p188_p9), %v597_v0  ;;  %520 = vset.pattern.permute.xlu0 (!%p188_p9), %v597_v0  ;;  %v347_v50 = vstv (!%p188_p9), %s473_s8 }
   0xf   : > { %v680_v15 = vand.u32 (!%p188_p9), 127, %v305_v11  ;;  %v345_v48 = vshrl.u32 (!%p188_p9), %v305_v11, 7  ;;  %s230_s9 = sand.u32 (!%p188_p9), 1, %s587_s13   ;;  %s598_s27 = smov (!%p188_p9), [#allocation2]  }
  0x10   : > { %s231_s10 = scalar_lea.vmem (!%p188_p9), [#allocation2], %s230_s9  ;;  %s537_s16 = sshll.u32 (!%p188_p9), %s598_s27, 4  ;;  %s538_s16 = int_to_ptr.vmem [resolvable:$false] %s537_s16 }
  0x11   : > { %v346_v51 = vadd.s32 (!%p188_p9), 8, %v345_v48  ;;  %v348_v54 = vadd.s32 (!%p188_p9), %v347_v50, %v345_v48  ;;  %s384_s11 = sshll.u32 (!%p188_p9), %s231_s10, 4  ;;  %vm367_vm6 = vcmp.eq.s32.totalorder (!%p188_p9), %v680_v15, 0  ;;  %s704_s11 = int_to_ptr.vmem [resolvable:$true] %s384_s11 }
  0x12   : > { %s533_s26 = scalar_lea.vmem (!%p188_p9), %s704_s11, 16  ;;  %p540_p0 = scmp.lt.s32.totalorder (!%p188_p9), %s704_s11, %s538_s16 }
  0x13   : > { %v349_v57 = vadd.s32 (!%p188_p9), %v347_v50, %v346_v51  ;;  %vm350_vm3 = vcmp.lt.s32.totalorder (!%p188_p9), %v348_v54, 20  ;;  %p534_p11 = scmp.ne.s32.totalorder (!%p188_p9), %s704_s11, %s533_s26 }
  0x15   : > { %s755_s24 = smov (!%p237_p10, %s467_s24), 2  ;;  %vm351_vm4 = vcmp.lt.s32.totalorder %v349_v57, 20  ;;  %p535_p12 = pnand %p534_p11, %p657_p5 }
  0x16   : > { %s668_s25 = sshll.u32 %s755_s24, 3  ;;  %s702_s24 = scalar_lea.hbm %s747_s3, %s473_s8 }
  0x17   : > { %s240_s28 = scalar_lea.vmem %s744_s0, %s668_s25  ;;  %s254_s4 = scalar_lea.vmem %s745_s1, %s668_s25 }
  0x18   : > { %v274_v1 = vld [vmem:[%s240_s28] sm:$0xff]  ;;  %v275_v2 = vld [vmem:[%s240_s28 + $0x8] sm:$0xff]  ;;  %s268_s7 = scalar_lea.vmem %s746_s2, %s668_s25  ;;  %s372_s25 = scalar_lea.sflag [#allocation3], %s230_s9 }
  0x19   : > { %v276_v3 = vld [vmem:[%s254_s4] sm:$0xff]  ;;  %v281_v4 = vsel %vm280_vm0, %v274_v1, -inf  ;;  %v277_v5 = vld [vmem:[%s254_s4 + $0x8] sm:$0xff]  ;;  %v284_v6 = vsel %vm280_vm0, %v275_v2, -inf  ;;  %p536_p13 = pneg %p535_p12  ;;  %s539_s28 = scalar_lea.vmem %s538_s16, 32 }
  0x1a   : > { %308 = vperm.xlu1 %519, %v276_v3   ;;  %282 = vmax.xlane.f32.xlu0 %v281_v4  ;;  %v278_v28 = vld [vmem:[%s268_s7] sm:$0xff]  ;;  %v279_v34 = vld [vmem:[%s268_s7 + $0x8] sm:$0xff]  ;;  %p541_p1 = scmp.lt.s32.totalorder %s539_s28, %s533_s26 }
  0x1b   : > { %v325_v32 = vsub.f32 0.0, %v278_v28  ;;  %v326_v39 = vsub.f32 0.0, %v279_v34 }
  0x1c   : > { %p542_p2 = por %p541_p1, %p540_p0 }
  0x1e   : > { %311 = vperm.xlu1 %519, %v277_v5   ;;  %285 = vmax.xlane.f32.xlu0 %v284_v6  ;;  %p543_p3 = pnand %p542_p2, %p536_p13 }
  0x99   : > { %v309_v14 = vpop.permute.xlu1 %308 }
  0x9a   : > { %vm313_vm1 = vcmp.eq.s32.totalorder %v680_v15, %v309_v14 }
  0x9b   : > { %v315_v18 = vsel %vm313_vm1, %v274_v1, 0.0 }
  0x9c   : > { %v317_v20 = vsel %vm280_vm0, %v315_v18, 0.0 }
  0x9d   : > { %v312_v16 = vpop.permute.xlu1 %311 }
  0x9e   : > { %vm314_vm2 = vcmp.eq.s32.totalorder %v680_v15, %v312_v16 }
  0x9f   : > { %v316_v22 = vsel %vm314_vm2, %v275_v2, 0.0 }
  0xa0   : > { %v320_v24 = vsel %vm280_vm0, %v316_v22, 0.0 }
  0xa7   : > { %v283_v7 = vpop.xlane.xlu0 %282 }
  0xa8   : > { %v287_v8 = vsub.f32 %v274_v1, %v283_v7 }
  0xaa   : > { %v289_v9 = vmul.f32 1.442695, %v287_v8 }
  0xab   : > { %v286_v10 = vpop.xlane.xlu0 %285 }
  0xac   : > { %521 = vpow2.f32 %v289_v9  ;;  %v288_v12 = vsub.f32 %v275_v2, %v286_v10 }
  0xae   : > { %v291_v13 = vmul.f32 1.442695, %v288_v12 }
  0xb0   : > { %523 = vpow2.f32 %v291_v13 }
  0xb6   : > { %v522_v17 = vpop.eup %521 }
  0xb7   : > { %v293_v19 = vsel %vm280_vm0, %v522_v17, 0.0 }
  0xb8   : > { %294 = vadd.xlane.f32.xlu0 %v293_v19 }
  0xba   : > { %v524_v21 = vpop.eup %523 }
  0xbb   : > { %v296_v23 = vsel %vm280_vm0, %v524_v21, 0.0 }
  0xbc   : > { %297 = vadd.xlane.f32.xlu1 %v296_v23  ;;  %318 = vadd.xlane.f32.xlu0 %v317_v20 }
  0xc0   : > { %321 = vadd.xlane.f32.xlu0 %v320_v24 }
 0x145   : > { %v295_v25 = vpop.xlane.xlu0 %294 }
 0x146   : > { %525 = vlog2.f32 %v295_v25 }
 0x149   : > { %v298_v26 = vpop.xlane.xlu1 %297  ;;  %v319_v30 = vpop.xlane.xlu0 %318 }
 0x14a   : > { %527 = vlog2.f32 %v298_v26 }
 0x14d   : > { %v322_v40 = vpop.xlane.xlu0 %321 }
 0x150   : > { %v526_v27 = vpop.eup %525 }
 0x151   : > { %v300_v29 = vmul.f32 0.6931472, %v526_v27 }
 0x153   : > { %v303_v31 = vadd.f32 %v300_v29, %v283_v7 }
 0x154   : > { %v528_v33 = vpop.eup %527 }
 0x155   : > { %v302_v35 = vmul.f32 0.6931472, %v528_v33  ;;  %v323_v36 = vsub.f32 %v319_v30, %v303_v31 }
 0x157   : > { %v327_v37 = vmul.f32 %v325_v32, %v323_v36  ;;  %v304_v38 = vadd.f32 %v302_v35, %v286_v10 }
 0x159   : > { %v329_v41 = vsub.f32 0.0, %v327_v37  ;;  %v324_v42 = vsub.f32 %v322_v40, %v304_v38 }
 0x15b   : > { %v331_v43 = vmul.f32 1.442695, %v329_v41  ;;  %v328_v44 = vmul.f32 %v326_v39, %v324_v42 }
 0x15d   : > { %529 = vpow2.f32 %v331_v43  ;;  %v330_v45 = vsub.f32 0.0, %v328_v44 }
 0x15f   : > { %v333_v46 = vmul.f32 1.442695, %v330_v45 }
 0x161   : > { %531 = vpow2.f32 %v333_v46 }
 0x167   : > { %v530_v47 = vpop.eup %529 }
 0x168   : > { %v335_v49 = vsub.f32 1.0, %v530_v47 }
 0x16a   : > { %v337_v52 = vmax.f32 %v335_v49, 0.0 }
 0x16b   : > { %v532_v53 = vpop.eup %531 }
 0x16c   : > { %v339_v55 = vmul.f32 %v337_v52, %v337_v52  ;;  %v336_v56 = vsub.f32 1.0, %v532_v53 }
 0x16e   : > { %v341_v58 = vmul.f32 %v339_v55, %v327_v37  ;;  %v338_v59 = vmax.f32 %v336_v56, 0.0 }
 0x170   : > { %v340_v60 = vmul.f32 %v338_v59, %v338_v59  ;;  %v352_v62 = vsel %vm350_vm3, %v341_v58, 0.0 }
 0x171   : > { %v355_v0 = vsel %vm354_vm5, %v352_v62, 0.0 }
 0x172   : > { %v342_v61 = vmul.f32 %v340_v60, %v328_v44 }
 0x174   : > { %v353_v63 = vsel %vm351_vm4, %v342_v61, 0.0 }
 0x175   : > { %v356_v1 = vsel %vm354_vm5, %v353_v63, 0.0 }
 0x176   : > { %v357_v2 = vadd.f32 %v356_v1, %v355_v0 }
 0x178   : > { %358 = vadd.xlane.f32.xlu0 %v357_v2 }
 0x205   : > { %v359_v3 = vpop.xlane.xlu0 %358 }
 0x206   : > { %v360_v4 = vrot.slane %v359_v3, 4 }
 0x208   : > { %v361_v5 = vadd.f32 %v360_v4, %v359_v3 }
 0x20a   : > { %v362_v6 = vrot.slane %v361_v5, 2 }
 0x20c   : > { %v363_v7 = vadd.f32 %v362_v6, %v361_v5 }
 0x20e   : > { %v364_v8 = vrot.slane %v363_v7, 1 }
 0x210   : > { %v365_v9 = vadd.f32 %v364_v8, %v363_v7 }
 0x212   : > { %477 = vpush %v365_v9 }
 0x243   : > { %s478_s17 = spop %477 }
 0x244   : > { %v368_v10 = vstv %s478_s17 }
 0x245   : > { %v369_v11 = vsel %vm367_vm6, %v368_v10, 0.0 }
 0x246   : > { %370 = vst [vmem:[%s231_s10] sm:$0x1] %v369_v11 }
 0x247   : > { %546 = shalt.err (!%p543_p3)
}
 0x248   : > { %s547_s29 = scalar_lea.hbm %s702_s24, 16  ;;  %s551_s5 = scalar_lea.hbm %s747_s3, 32 }
 0x249   : > { %p548_p4 = scmp.ne.s32.totalorder %s702_s24, %s547_s29  ;;  %p552_p9 = scmp.lt.u32.totalorder %s702_s24, %s747_s3 }
 0x24a   : > { %p553_p10 = scmp.lt.u32.totalorder %s551_s5, %s547_s29  ;;  %p555_p12 = scmp.lt.u32.totalorder %s547_s29, %s702_s24 }
 0x24b   : > { %p549_p7 = pnand %p548_p4, %p657_p5 }
 0x24c   : > { %p554_p11 = por %p553_p10, %p552_p9 }
 0x24d   : > { %p550_p8 = pneg %p549_p7 }
 0x24e   : > { %p556_p13 = por %p555_p12, %p554_p11 }
 0x250   : > { %p557_p0 = pnand %p556_p13, %p550_p8 }
 0x252   : > { %560 = shalt.err (!%p557_p0)
}
 0x253   : > { %479 = dma.vmem_to_hbm [thread:$0]  (%p657_p5), %s704_s11, 16, %s702_s24, %s372_s25  }
 0x254 PF: > { %p485_p1 = scmp.ge.s32.totalorder %s595_s15, 2  ;;  %s396_s8 = sand.u32 1, %s583_s12  }
 0x255   : > { %s397_s9 = scalar_lea.sflag [#allocation3], %s396_s8 }
 0x256   : > { %p482_p2 = pnand %p485_p1, %p661_p6 }
 0x258   : > { %578 = dma.done.wait (!%p482_p2), %s397_s9, 16  }
 0x259   : > { %580 = vsyncadd (!%p482_p2), %s397_s9, 4294967280  ;;  %p13_p3 = scmp.ge.s32.totalorder %s644_s18, 4   ;;  %s750_s12 = smov %s587_s13 }
 0x25a   : > { %s751_s13 = smov %s591_s14  ;;  %s752_s14 = smov %s655_s21 }
 0x25b   : > { %s753_s15 = smov %s644_s18  ;;  %15 = sbr.rel (!%p13_p3) target bundleno = 3 (0x3), region = 73 }
 0x262   :  { %401 = vsyncpa [#allocation3], 1 }
 0x263   :  { %403 = vsyncpa [#allocation3 + $0x1], 1 }

</bundles_post_ra>
